<compile_context>
chip_gen: v6e
topology: v6e:2x2x1
jax: 0.10.0
libtpu: 0.0.40
codegen_flags: <defaults>
</compile_context>

<pallas_src>
import functools

import jax
import jax.numpy as jnp
from jax.experimental import pallas as pl
from jax.experimental.pallas import tpu as pltpu


# Target f32-equivalent size of one input block (~1 MiB).  Measured pipelines
# reach ~85% of HBM roofline at >=0.5-1 MiB tiles; with double buffering of two
# inputs plus in-kernel f32 temporaries this stays inside v5e's 16 MiB scoped
# default and v7x's 64 MiB physical VMEM.
_TARGET_BLOCK_F32_ELEMS = (1 << 20) // 4


def _largest_divisor_leq(n, cap):
    best = 1
    i = 1
    while i * i <= n:
        if n % i == 0:
            for d in (i, n // i):
                if best < d <= cap:
                    best = d
        i += 1
    return best


def _pick_row_block(nh, p, elems_per_patch_row):
    """Largest rb dividing nh with rb*p 8-sublane aligned (or rb == nh) whose
    f32 block stays under the VMEM target; smallest legal band as fallback."""
    valid = [rb for rb in range(1, nh + 1)
             if nh % rb == 0 and ((rb * p) % 8 == 0 or rb == nh)]
    fitting = [rb for rb in valid
               if rb * elems_per_patch_row <= _TARGET_BLOCK_F32_ELEMS]
    return max(fitting) if fitting else min(valid)


# ----------------------------------------------------------------------------
# Kernels
# ----------------------------------------------------------------------------
def _flat_mse_kernel(x_ref, t_ref, out_ref):
    """Lane-dense fast path: plain sum of squared differences per chunk."""
    x = x_ref[0].astype(jnp.float32)          # (rows, 128)
    t = t_ref[0].astype(jnp.float32)
    s = jnp.sum((x - t) ** 2)
    lane = jax.lax.broadcasted_iota(jnp.int32, out_ref.shape,
                                    len(out_ref.shape) - 1)
    out_ref[...] = jnp.where(lane == 0, s, 0.0)


def _masked_mse_kernel(*refs, norm_pix, has_mask, p, rb):
    it = iter(refs)
    x_ref = next(it)
    t_ref = next(it)
    m_ref = next(it) if has_mask else None
    if rb > 1 and (norm_pix or has_mask):
        R_ref, RT_ref = next(it), next(it)
    else:
        R_ref = RT_ref = None
    if norm_pix:
        P_ref, PT_ref = next(it), next(it)
    else:
        P_ref = PT_ref = None
    out_ref = next(it)

    f32 = jnp.float32
    hi = jax.lax.Precision.HIGHEST

    x = x_ref[0].astype(f32)                  # (C, rb*p, W)
    t = t_ref[0].astype(f32)
    C, rbp, W = x.shape
    d = C * p * p                             # elements per patch

    RT = RT_ref[...] if RT_ref is not None else None       # (rb, rbp)

    if norm_pix:
        P = P_ref[...]                        # (W, nw)  image col -> patch col
        PT = PT_ref[...]                      # (nw, W)  patch col -> image col
        R = R_ref[...] if R_ref is not None else None       # (rbp, rb)

        def per_patch_sum(v):                 # (rbp, W) -> (rb, nw)
            if rb == 1:
                v = jnp.sum(v, axis=0, keepdims=True)
            else:
                v = jnp.dot(RT, v, precision=hi, preferred_element_type=f32)
            return jnp.dot(v, P, precision=hi, preferred_element_type=f32)

        def to_pixels(s):                     # (rb, nw) -> (1 or rbp, W)
            s = jnp.dot(s, PT, precision=hi, preferred_element_type=f32)
            if rb > 1:
                s = jnp.dot(R, s, precision=hi, preferred_element_type=f32)
            return s

        # Two-pass mean / unbiased variance per patch (matches torch .var()).
        # TODO(synk): d == 1 (C*p*p == 1) divides by zero; degenerate config.
        mean = to_pixels(per_patch_sum(jnp.sum(t, axis=0)) / float(d))
        diff = t - mean[None]
        var = per_patch_sum(jnp.sum(diff * diff, axis=0)) / float(d - 1)
        t = diff * to_pixels(jax.lax.rsqrt(var + 1e-6))[None]

    sq = (x - t) ** 2                         # (C, rb*p, W)

    if has_mask:
        m = m_ref[...][0, :, 0, :]            # (rb, W) per-image-column mask
        sq_hw = jnp.sum(sq, axis=0)           # (rbp, W)
        if rb == 1:
            pooled = jnp.sum(sq_hw, axis=0, keepdims=True)      # (1, W)
        else:
            pooled = jnp.dot(RT, sq_hw, precision=hi,
                             preferred_element_type=f32)        # (rb, W)
        num = jnp.sum(pooled * m)
        w = float(p) * jnp.sum(m)             # = per-pixel mask sum of band
    else:
        num = jnp.sum(sq)
        w = jnp.float32(rbp * W)              # per-channel pixel count of band

    # One lane-dense (1, 1, 8, 128) output block per (sample, band):
    # lane 0 = num, lane 1 = weight.  No accumulation across grid steps.
    lane = jax.lax.broadcasted_iota(jnp.int32, out_ref.shape,
                                    len(out_ref.shape) - 1)
    out_ref[...] = jnp.where(lane == 0, num, jnp.where(lane == 1, w, 0.0))


# ----------------------------------------------------------------------------
# Wrapper
# ----------------------------------------------------------------------------
def masked_mse_loss(inp, target, mask=None, *, patch_size=16, stride=1,
                    norm_pix=False):
    """Pallas implementation of MaskedMSELoss.forward (inputs NCHW)."""
    if isinstance(patch_size, (list, tuple)):
        p = patch_size[0] // stride
    else:
        p = patch_size // stride
    B, C, H, W = inp.shape
    nh, nw = H // p, W // p
    # TODO(synk): H % p != 0 or W % p != 0 silently drops the remainder rows /
    # cols (torch's rearrange would raise); only exact tilings are supported.

    # Keep the big DMAs in the native (possibly narrow) dtype; compute in f32.
    if not jnp.issubdtype(inp.dtype, jnp.floating):
        inp = inp.astype(jnp.float32)
    if not jnp.issubdtype(target.dtype, jnp.floating):
        target = target.astype(jnp.float32)

    has_mask = mask is not None
    total = B * C * H * W

    # ---- lane-dense fast path: plain global MSE ----------------------------
    if not has_mask and not norm_pix and total % 1024 == 0:
        chunk = 1024 * _largest_divisor_leq(total // 1024,
                                            _TARGET_BLOCK_F32_ELEMS // 1024)
        nblk = total // chunk
        rows = chunk // 128
        xf = inp.reshape(nblk, rows, 128)       # free reshape of NCHW buffer
        tf = target.reshape(nblk, rows, 128)
        stats = pl.pallas_call(
            _flat_mse_kernel,
            out_shape=jax.ShapeDtypeStruct((nblk, 8, 128), jnp.float32),
            grid=(nblk,),
            in_specs=[pl.BlockSpec((1, rows, 128), lambda i: (i, 0, 0)),
                      pl.BlockSpec((1, rows, 128), lambda i: (i, 0, 0))],
            out_specs=pl.BlockSpec((1, 8, 128), lambda i: (i, 0, 0)),
            compiler_params=pltpu.CompilerParams(
                dimension_semantics=("parallel",)),
        )(xf, tf)
        return (jnp.sum(stats[:, 0, 0]) / float(total)).astype(jnp.float32)

    # ---- row-band path ------------------------------------------------------
    rb = _pick_row_block(nh, p, C * p * W)
    nbands = nh // rb
    grid = (B, nbands)

    in_specs = [
        pl.BlockSpec((1, C, rb * p, W), lambda b, i: (b, 0, i, 0)),
        pl.BlockSpec((1, C, rb * p, W), lambda b, i: (b, 0, i, 0)),
    ]
    args = [inp, target]

    if has_mask:
        # Per-image-column mask (B, nh, 1, W); the nearest-neighbour row
        # upsample is folded analytically, no (B, H, W) per-pixel mask.
        m = mask.astype(jnp.float32).reshape(B, nh, nw)
        m_cols = jnp.repeat(m, p, axis=2)[:, :, None, :]
        in_specs.append(pl.BlockSpec((1, rb, 1, W), lambda b, i: (b, i, 0, 0)))
        args.append(m_cols)

    # Hoisted one-hot pooling constants (constant index_map -> fetched once).
    if rb > 1 and (norm_pix or has_mask):
        rows_i = jnp.arange(rb * p)
        R = (rows_i[:, None] // p == jnp.arange(rb)[None, :]).astype(jnp.float32)
        RT = R.T
        in_specs += [pl.BlockSpec(R.shape, lambda b, i: (0, 0)),
                     pl.BlockSpec(RT.shape, lambda b, i: (0, 0))]
        args += [R, RT]
    if norm_pix:
        cols_i = jnp.arange(W)
        P = (cols_i[:, None] // p == jnp.arange(nw)[None, :]).astype(jnp.float32)
        PT = P.T
        in_specs += [pl.BlockSpec(P.shape, lambda b, i: (0, 0)),
                     pl.BlockSpec(PT.shape, lambda b, i: (0, 0))]
        args += [P, PT]

    kernel = functools.partial(
        _masked_mse_kernel, norm_pix=norm_pix, has_mask=has_mask, p=p, rb=rb)

    stats = pl.pallas_call(
        kernel,
        out_shape=jax.ShapeDtypeStruct((B, nbands, 8, 128), jnp.float32),
        grid=grid,
        in_specs=in_specs,
        out_specs=pl.BlockSpec((1, 1, 8, 128), lambda b, i: (b, i, 0, 0)),
        compiler_params=pltpu.CompilerParams(
            dimension_semantics=("parallel", "parallel")),
    )(*args)

    num = jnp.sum(stats[:, :, 0, 0], axis=1)   # per-sample sum (x-t)^2 * mask
    wsum = jnp.sum(stats[:, :, 0, 1], axis=1)  # per-sample mask-pixel count

    if has_mask:
        per = num / jnp.where(wsum > 0, float(C) * wsum, 1.0)
        valid = (wsum > 0).astype(jnp.float32)
        loss = jnp.sum(per * valid) / jnp.maximum(jnp.sum(valid), 1.0)
        # torch early-returns 0 when mask.sum() == 0
        return jnp.where(jnp.sum(wsum) > 0, loss, 0.0).astype(jnp.float32)
    return (jnp.sum(num) / (float(C) * jnp.sum(wsum))).astype(jnp.float32)


# ----------------------------------------------------------------------------
# Pure-JAX reference (mirrors the torch code path literally)
# ----------------------------------------------------------------------------
def _patchify(imgs, p):
    B, C, H, W = imgs.shape
    nh, nw = H // p, W // p
    x = imgs.reshape(B, C, nh, p, nw, p)
    x = x.transpose(0, 2, 4, 3, 5, 1)
    return x.reshape(B, nh * nw, p * p * C)


def _unpatchify(x, p, C, H, W):
    B = x.shape[0]
    nh, nw = H // p, W // p
    x = x.reshape(B, nh, nw, p, p, C)
    x = x.transpose(0, 5, 1, 3, 2, 4)
    return x.reshape(B, C, H, W)


def reference_loss(inp, target, mask=None, *, patch_size=16, stride=1,
                   norm_pix=False):
    p = patch_size // stride
    B, C, H, W = inp.shape
    nh, nw = H // p, W // p
    inp = inp.astype(jnp.float32)
    target = target.astype(jnp.float32)
    if norm_pix:
        tpch = _patchify(target, p)
        mean = tpch.mean(axis=-1, keepdims=True)
        var = jnp.var(tpch, axis=-1, ddof=1, keepdims=True)
        tpch = (tpch - mean) / jnp.sqrt(var + 1e-6)
        target = _unpatchify(tpch, p, C, H, W)
    loss = (inp - target) ** 2
    if mask is not None:
        mask = mask.astype(jnp.float32)
        if float(mask.sum()) == 0.0:
            return jnp.float32(0.0)
        m = mask.reshape(B, nh, nw)
        mfull = jnp.repeat(jnp.repeat(m, p, axis=1), p, axis=2)  # nearest
        loss = loss.mean(axis=1)                                 # channel mean
        loss = loss * mfull
        per = loss.reshape(B, -1).sum(axis=-1) / mfull.reshape(B, -1).sum(axis=-1)
        return jnp.nanmean(per)
    return loss.mean()


# ----------------------------------------------------------------------------
if __name__ == "__main__":
    key = jax.random.PRNGKey(0)
    k1, k2, k3, k4, k5, k6 = jax.random.split(key, 6)

    def run_case(xi, ti, mask, patch_size, norm_pix, rtol=1e-4, atol=1e-5):
        got = masked_mse_loss(xi, ti, mask, patch_size=patch_size, stride=1,
                              norm_pix=norm_pix)
        got = jax.block_until_ready(got)
        want = reference_loss(xi, ti, mask, patch_size=patch_size, stride=1,
                              norm_pix=norm_pix)
        assert jnp.allclose(got, want, rtol=rtol, atol=atol), (
            f"mismatch: got={got} want={want} patch={patch_size} "
            f"norm_pix={norm_pix} "
            f"mask={'None' if mask is None else tuple(mask.shape)}")

    # --- main config: B=2, C=4, 16x16 images, patch 8 (rb=2 band path) ------
    B, C, H, W = 2, 4, 16, 16
    x = jax.random.normal(k1, (B, C, H, W), jnp.float32)
    t = jax.random.normal(k2, (B, C, H, W), jnp.float32)

    p8 = 8
    L8 = (H // p8) * (W // p8)
    mask8 = (jax.random.uniform(k3, (B, L8)) > 0.4).astype(jnp.float32)
    mask8 = mask8.at[0, 0].set(1.0)

    run_case(x, t, mask8, p8, False)
    run_case(x, t, mask8, p8, True)
    run_case(x, t, None, p8, False)          # flat lane-dense fast path
    run_case(x, t, None, p8, True)
    # one sample fully unmasked -> exercises the nanmean path
    mask_nan = jnp.array([[0., 0., 0., 0.], [1., 0., 1., 1.]], jnp.float32)
    run_case(x, t, mask_nan, p8, False)
    # global mask.sum() == 0 -> early return 0
    run_case(x, t, jnp.zeros((B, L8), jnp.float32), p8, False)

    # --- patch 4 -> rb=4 (generic multi-patch-row pooling path) -------------
    p4 = 4
    L4 = (H // p4) * (W // p4)
    mask4 = (jax.random.uniform(k4, (B, L4)) > 0.5).astype(jnp.float32)
    mask4 = mask4.at[0, 0].set(1.0)
    run_case(x, t, mask4, p4, False)
    run_case(x, t, mask4, p4, True)

    # --- slightly larger config: C=3, 64x64, patch 16 ------------------------
    x2 = jax.random.normal(k5, (2, 3, 64, 64), jnp.float32)
    t2 = jax.random.normal(k6, (2, 3, 64, 64), jnp.float32)
    mask16 = (jax.random.uniform(k3, (2, 16)) > 0.4).astype(jnp.float32)
    mask16 = mask16.at[0, 0].set(1.0)
    run_case(x2, t2, mask16, 16, True)

    # --- no mask / no norm_pix where total % 1024 != 0 -> band path fallback -
    x3 = jax.random.normal(k4, (2, 3, 16, 16), jnp.float32)
    t3 = jax.random.normal(k5, (2, 3, 16, 16), jnp.float32)
    run_case(x3, t3, None, p8, False)

    # --- nh == 1 -> rb == 1 branches (mask + norm_pix + nanmean) -------------
    x4 = jax.random.normal(k6, (2, 4, 8, 16), jnp.float32)
    t4 = jax.random.normal(k1, (2, 4, 8, 16), jnp.float32)
    mask_r1 = jnp.array([[0., 0.], [1., 1.]], jnp.float32)
    run_case(x4, t4, mask_r1, p8, True)
    run_case(x4, t4, mask_r1, p8, False)

    # --- bf16 inputs: narrow-dtype DMA path (compute stays f32 in-kernel) ---
    run_case(x.astype(jnp.bfloat16), t.astype(jnp.bfloat16), mask8, p8, True,
             rtol=5e-3, atol=1e-4)
    run_case(x.astype(jnp.bfloat16), t.astype(jnp.bfloat16), None, p8, False,
             rtol=5e-3, atol=1e-4)

    print("KERNEL_OK")
</pallas_src>

<mosaic_0001>
module attributes {stable_mosaic.version = 11 : i64} {
  func.func @_masked_mse_kernel(%arg0: i32, %arg1: i32, %arg2: memref<1x4x16x16xf32, #tpu.memory_space<vmem>>, %arg3: memref<1x4x16x16xf32, #tpu.memory_space<vmem>>, %arg4: memref<1x2x1x16xf32, #tpu.memory_space<vmem>>, %arg5: memref<16x2xf32, #tpu.memory_space<vmem>>, %arg6: memref<2x16xf32, #tpu.memory_space<vmem>>, %arg7: memref<1x1x8x128xf32, #tpu.memory_space<vmem>>) attributes {dimension_semantics = [#tpu.dimension_semantics<parallel>, #tpu.dimension_semantics<parallel>], iteration_bounds = array<i64: 2, 1>, scalar_prefetch = 0 : i64, scratch_operands = 0 : i64, tpu.core_type = #tpu.core_type<tc>, window_params = [{transform_indices = @transform_0, window_bounds = array<i64: 1, 4, 16, 16>}, {transform_indices = @transform_1, window_bounds = array<i64: 1, 4, 16, 16>}, {transform_indices = @transform_2, window_bounds = array<i64: 1, 2, 1, 16>}, {pipeline_mode = #tpu.pipeline_mode<synchronous>, transform_indices = @transform_3, window_bounds = array<i64: 16, 2>}, {pipeline_mode = #tpu.pipeline_mode<synchronous>, transform_indices = @transform_4, window_bounds = array<i64: 2, 16>}, {transform_indices = @transform_5, window_bounds = array<i64: 1, 1, 8, 128>}]} {
    %c0 = arith.constant 0 : index
    %c0_0 = arith.constant 0 : index
    %c0_1 = arith.constant 0 : index
    %c0_2 = arith.constant 0 : index
    %0 = vector.load %arg2[%c0, %c0_0, %c0_1, %c0_2] : memref<1x4x16x16xf32, #tpu.memory_space<vmem>>, vector<1x4x16x16xf32>
    %1 = vector.shape_cast %0 : vector<1x4x16x16xf32> to vector<4x16x16xf32>
    %c0_3 = arith.constant 0 : index
    %c0_4 = arith.constant 0 : index
    %c0_5 = arith.constant 0 : index
    %c0_6 = arith.constant 0 : index
    %2 = vector.load %arg3[%c0_3, %c0_4, %c0_5, %c0_6] : memref<1x4x16x16xf32, #tpu.memory_space<vmem>>, vector<1x4x16x16xf32>
    %3 = vector.shape_cast %2 : vector<1x4x16x16xf32> to vector<4x16x16xf32>
    %c0_7 = arith.constant 0 : index
    %c0_8 = arith.constant 0 : index
    %4 = vector.load %arg6[%c0_7, %c0_8] : memref<2x16xf32, #tpu.memory_space<vmem>>, vector<2x16xf32>
    %5 = arith.subf %1, %3 : vector<4x16x16xf32>
    %6 = arith.mulf %5, %5 : vector<4x16x16xf32>
    %c0_9 = arith.constant 0 : index
    %c0_10 = arith.constant 0 : index
    %c0_11 = arith.constant 0 : index
    %c0_12 = arith.constant 0 : index
    %7 = vector.load %arg4[%c0_9, %c0_10, %c0_11, %c0_12] : memref<1x2x1x16xf32, #tpu.memory_space<vmem>>, vector<1x2x1x16xf32>
    %8 = vector.shape_cast %7 : vector<1x2x1x16xf32> to vector<2x16xf32>
    %cst = arith.constant dense<0.000000e+00> : vector<16x16xf32>
    %9 = vector.multi_reduction <add>, %6, %cst [0] : vector<4x16x16xf32> to vector<16x16xf32>
    %cst_13 = arith.constant dense<0.000000e+00> : vector<2x16xf32>
    %10 = tpu.matmul %4, %9, %cst_13 {dimension_numbers = #tpu.dot_dimension_numbers<[1], [0], [0], [1], [0, 0, 1, 1], [], []>, precision = #tpu.contract_precision<fp32>} : vector<2x16xf32>, vector<16x16xf32>, vector<2x16xf32> -> vector<2x16xf32>
    %11 = arith.mulf %10, %8 : vector<2x16xf32>
    %12 = vector.shape_cast %11 : vector<2x16xf32> to vector<1x2x16xf32>
    %cst_14 = arith.constant dense<0.000000e+00> : vector<1xf32>
    %13 = vector.multi_reduction <add>, %12, %cst_14 [1, 2] : vector<1x2x16xf32> to vector<1xf32>
    %14 = vector.shape_cast %13 : vector<1xf32> to vector<1x1x1xf32>
    %15 = vector.extract %14[0, 0, 0] : f32 from vector<1x1x1xf32>
    %16 = vector.shape_cast %8 : vector<2x16xf32> to vector<1x2x16xf32>
    %cst_15 = arith.constant dense<0.000000e+00> : vector<1xf32>
    %17 = vector.multi_reduction <add>, %16, %cst_15 [1, 2] : vector<1x2x16xf32> to vector<1xf32>
    %18 = vector.shape_cast %17 : vector<1xf32> to vector<1x1x1xf32>
    %19 = vector.extract %18[0, 0, 0] : f32 from vector<1x1x1xf32>
    %cst_16 = arith.constant 8.000000e+00 : f32
    %20 = arith.mulf %cst_16, %19 : f32
    %21 = tpu.iota {dimensions = array<i32: 3>} : vector<1x1x8x128xi32>
    %c0_i32 = arith.constant 0 : i32
    %22 = vector.broadcast %c0_i32 : i32 to vector<1x1x8x128xi32>
    %23 = arith.cmpi eq, %21, %22 : vector<1x1x8x128xi32>
    %c1_i32 = arith.constant 1 : i32
    %24 = vector.broadcast %c1_i32 : i32 to vector<1x1x8x128xi32>
    %25 = arith.cmpi eq, %21, %24 : vector<1x1x8x128xi32>
    %cst_17 = arith.constant 0.000000e+00 : f32
    %26 = vector.broadcast %20 : f32 to vector<1x1x8x128xf32>
    %27 = vector.broadcast %cst_17 : f32 to vector<1x1x8x128xf32>
    %28 = arith.select %25, %26, %27 : vector<1x1x8x128xi1>, vector<1x1x8x128xf32>
    %29 = vector.broadcast %15 : f32 to vector<1x1x8x128xf32>
    %30 = arith.select %23, %29, %28 : vector<1x1x8x128xi1>, vector<1x1x8x128xf32>
    %c0_18 = arith.constant 0 : index
    %c0_19 = arith.constant 0 : index
    %c0_20 = arith.constant 0 : index
    %c0_21 = arith.constant 0 : index
    %31 = vector.load %arg7[%c0_18, %c0_19, %c0_20, %c0_21] : memref<1x1x8x128xf32, #tpu.memory_space<vmem>>, vector<1x1x8x128xf32>
    tpu.vector_store %arg7[%c0_18, %c0_19, %c0_20, %c0_21], %30 {strides = array<i32>} : memref<1x1x8x128xf32, #tpu.memory_space<vmem>>, vector<1x1x8x128xf32>,
    return
  }
  func.func @transform_0(%arg0: i32, %arg1: i32) -> (i32, i32, i32, i32) {
    %c0_i32 = arith.constant 0 : i32
    %c0_i32_0 = arith.constant 0 : i32
    %c0_i32_1 = arith.constant 0 : i32
    return %arg0, %c0_i32, %arg1, %c0_i32_0 : i32, i32, i32, i32
  }
  func.func @transform_1(%arg0: i32, %arg1: i32) -> (i32, i32, i32, i32) {
    %c0_i32 = arith.constant 0 : i32
    %c0_i32_0 = arith.constant 0 : i32
    %c0_i32_1 = arith.constant 0 : i32
    return %arg0, %c0_i32, %arg1, %c0_i32_0 : i32, i32, i32, i32
  }
  func.func @transform_2(%arg0: i32, %arg1: i32) -> (i32, i32, i32, i32) {
    %c0_i32 = arith.constant 0 : i32
    %c0_i32_0 = arith.constant 0 : i32
    %c0_i32_1 = arith.constant 0 : i32
    return %arg0, %arg1, %c0_i32, %c0_i32_0 : i32, i32, i32, i32
  }
  func.func @transform_3(%arg0: i32, %arg1: i32) -> (i32, i32) {
    %c0_i32 = arith.constant 0 : i32
    %c0_i32_0 = arith.constant 0 : i32
    %c0_i32_1 = arith.constant 0 : i32
    return %c0_i32, %c0_i32_0 : i32, i32
  }
  func.func @transform_4(%arg0: i32, %arg1: i32) -> (i32, i32) {
    %c0_i32 = arith.constant 0 : i32
    %c0_i32_0 = arith.constant 0 : i32
    %c0_i32_1 = arith.constant 0 : i32
    return %c0_i32, %c0_i32_0 : i32, i32
  }
  func.func @transform_5(%arg0: i32, %arg1: i32) -> (i32, i32, i32, i32) {
    %c0_i32 = arith.constant 0 : i32
    %c0_i32_0 = arith.constant 0 : i32
    %c0_i32_1 = arith.constant 0 : i32
    return %arg0, %arg1, %c0_i32, %c0_i32_0 : i32, i32, i32, i32
  }
}

</mosaic_0001>

<bundles_post_ra>
// kernel: tpu_custom_call.1
= control target key start
LH: loop header
LB: loop body
LE: loop exit
PB: predicated region body
PF: predicated region fallthrough
CT: control target
= control target key end

     0   :  { %s1602_s0 = inlined_call_operand.hbm [shape: f32[2,4,16,16], index: 0, kind: input, shape index: {}]   ;;  %s1603_s1 = inlined_call_operand.hbm [shape: f32[2,4,16,16], index: 1, kind: input, shape index: {}]   ;;  %s1604_s2 = inlined_call_operand.vmem [shape: f32[2,2,1,16], index: 2, kind: input, shape index: {}]   ;;  %s1605_s3 = inlined_call_operand.vmem [shape: f32[16,2], index: 3, kind: input, shape index: {}]   ;;  %s1606_s4 = inlined_call_operand.vmem [shape: f32[2,16], index: 4, kind: input, shape index: {}]   ;;  %s1607_s5 = inlined_call_operand.hbm [shape: f32[2,1,8,128], index: 5, kind: output, shape index: {}]  }
   0x1   :  { %1609 = sst [smem:[#allocation12_spill]] %s1602_s0 }
   0x2   :  { %10 = vsyncpa [#allocation3], 0 }
   0x3   :  { %12 = vsyncpa [#allocation3 + $0x1], 0 }
   0x4   :  { %13 = vsyncpa [#allocation6], 0 }
   0x5   :  { %15 = vsyncpa [#allocation6 + $0x1], 0 }
   0x6   :  { %16 = vsyncpa [#allocation4], 0 }
   0x7   :  { %18 = vsyncpa [#allocation4 + $0x1], 0  ;;  %s1377_s18 = smov 0   ;;  %s1379_s19 = smov 0  }
   0x8   :  { %s1381_s20 = smov 0   ;;  %s1383_s21 = smov 0  }
   0x9   :  { %s1385_s3 = smov 0   ;;  %s1387_s22 = smov 0  }
   0xa LB: > { %s1040_s23 = sadd.s32 4294967295, %s1337_s22   ;;  %s1041_s24 = sadd.s32 4294967294, %s1337_s22   ;;  %s1337_s22 = sphi %s1387_s22, %s24_s22   ;;  %s1333_s3 = sphi %s1385_s3, %s1623_s3   ;;  %s1329_s21 = sphi %s1383_s21, %s1622_s21   ;;  %s1325_s20 = sphi %s1381_s20, %s1621_s20   ;;  %s1321_s19 = sphi %s1379_s19, %s1620_s19   ;;  %s1317_s18 = sphi %s1377_s18, %s1619_s18  }
   0xb   : > { %s36_s25 = sadd.s32 1, %s1333_s3  ;;  %s45_s26 = sadd.s32 1, %s1325_s20 }
   0xc   : > { %p38_p0 = scmp.ge.s32.totalorder %s36_s25, 2  ;;  %p52_p1 = scmp.ne.s32.totalorder %s1325_s20, %s1321_s19 }
   0xd   : > { %p53_p2 = scmp.eq.s32.totalorder %s1337_s22, 0  ;;  %p58_p3 = scmp.ne.s32.totalorder %s1321_s19, %s1317_s18 }
   0xe   : > { %s1625_s25 = smov (%p38_p0, %s36_s25), 0  ;;  %p59_p5 = scmp.eq.s32.totalorder %s1040_s23, 0 }
   0xf   : > { %1610 = sst [smem:[#allocation11_spill]] %s1625_s25  ;;  %p1418_p4 = por %p53_p2, %p52_p1 }
  0x10   : > { %s40_s28 = ssub.s32 %s1333_s3, %s1625_s25  ;;  %p182_p6 = scmp.eq.s32.totalorder %s1040_s23, 1 }
  0x11   : > { %p43_p7 = scmp.eq.s32.totalorder %s40_s28, 0  ;;  %p1424_p8 = por %p59_p5, %p58_p3 }
  0x12   : > { %p1428_p9 = por %p182_p6, %p52_p1  ;;  %p188_p10 = scmp.eq.s32.totalorder %s1041_s24, 1 }
  0x13   : > { %s1433_s6 = scalar_select %p43_p7, %s1325_s20, %s45_s26  }
  0x14   : > { %p1435_p11 = por %p188_p10, %p58_p3  ;;  %p1043_p12 = scmp.ge.s32.totalorder %s1337_s22, 2 }
  0x15   : > { %p1142_p13 = scmp.lt.s32.totalorder %s1337_s22, 2  ;;  %s1442_s8 = sand.u32 1, %s1325_s20  }
  0x16   : > { %s1044_s9 = sshll.u32 %s1442_s8, 6  ;;  %s1059_s10 = sshll.u32 %s1333_s3, 10 }
  0x17   : > { %s1615_s0 = sld [smem:[#allocation12_spill]]  ;;  %s218_s14 = scalar_lea.vmem [#allocation2], %s1044_s9 }
  0x18   : > { %s227_s15 = sshll.u32 %s218_s14, 4  ;;  %p1455_p0 = pnand %p1142_p13, %p1418_p4  ;;  %s228_s15 = int_to_ptr.vmem [resolvable:$true] %s227_s15 }
  0x19   : > { %p1050_p1 = scmp.ge.s32.totalorder %s1337_s22, 1  ;;  %s215_s17 = scalar_lea.sflag [#allocation3], %s1442_s8 }
  0x1a   : > { %p1199_p2 = pneg %p1455_p0  ;;  %s1210_s23 = scalar_lea.vmem %s228_s15, 1024 }
  0x1b   : > { %p1211_p3 = scmp.ne.s32.totalorder %s228_s15, %s1210_s23  ;;  %s1339_s24 = smov [#allocation2]  }
  0x1c   : > { %s1215_s26 = sshll.u32 %s1339_s24, 4  ;;  %s1216_s26 = int_to_ptr.vmem [resolvable:$false] %s1215_s26 }
  0x1d   : > { %s226_s13 = scalar_lea.hbm %s1615_s0, %s1059_s10  ;;  %p1213_p5 = pnand %p1211_p3, %p1199_p2 }
  0x1e   : > { %s1217_s27 = scalar_lea.vmem %s1216_s26, 2048  ;;  %p1218_p4 = scmp.lt.s32.totalorder %s228_s15, %s1216_s26 }
  0x1f   : > { %p1214_p6 = pneg %p1213_p5  ;;  %p1219_p7 = scmp.lt.s32.totalorder %s1217_s27, %s1210_s23 }
  0x21   : > { %p1220_p10 = por %p1219_p7, %p1218_p4 }
  0x23   : > { %p1221_p13 = pnand %p1220_p10, %p1214_p6 }
  0x25   : > { %1224 = shalt.err (!%p1221_p13)
}
  0x26   : > { %s1340_s28 = smov 128   ;;  %s1341_s11 = smov 8  }
  0x27   : > { %1134 = dma.hbm_to_vmem [thread:$0]  (!%p1455_p0), %s226_s13, 1024, %s228_s15, %s215_s17, %s1340_s28, %s1340_s28, %s1341_s11  }
  0x28   : > { %p270_p3 = scmp.lt.s32.totalorder %s1337_s22, 3  ;;  %s249_s23 = scalar_lea.hbm %s1603_s1, %s1059_s10 }
  0x29   : > { %s241_s26 = scalar_lea.vmem [#allocation5], %s1044_s9  ;;  %s238_s0 = scalar_lea.sflag [#allocation6], %s1442_s8 }
  0x2a   : > { %p1476_p5 = pnand %p1050_p1, %p270_p3  ;;  %s250_s27 = sshll.u32 %s241_s26, 4  ;;  %s251_s27 = int_to_ptr.vmem [resolvable:$true] %s250_s27 }
  0x2b   : > { %s1238_s25 = scalar_lea.vmem %s251_s27, 1024  ;;  %s1342_s13 = smov [#allocation5]  }
  0x2c   : > { %p1239_p6 = scmp.ne.s32.totalorder %s251_s27, %s1238_s25  ;;  %s1243_s15 = sshll.u32 %s1342_s13, 4  ;;  %s1244_s15 = int_to_ptr.vmem [resolvable:$false] %s1243_s15 }
  0x2d   : > { %s1245_s10 = scalar_lea.vmem %s1244_s15, 2048  ;;  %p1246_p10 = scmp.lt.s32.totalorder %s251_s27, %s1244_s15 }
  0x2e   : > { %p1241_p4 = pnand %p1239_p6, %p1199_p2  ;;  %p1247_p1 = scmp.lt.s32.totalorder %s1245_s10, %s1238_s25 }
  0x30   : > { %p1242_p7 = pneg %p1241_p4  ;;  %p1248_p13 = por %p1247_p1, %p1246_p10 }
  0x32   : > { %p1249_p3 = pnand %p1248_p13, %p1242_p7 }
  0x34   : > { %1252 = shalt.err (!%p1249_p3)
}
  0x35   : > { %1137 = dma.hbm_to_vmem [thread:$0]  (!%p1455_p0), %s249_s23, 1024, %s251_s27, %s238_s0, %s1340_s28, %s1340_s28, %s1341_s11  }
  0x36   : > { %274 = sbr.rel (%p1476_p5) target bundleno = 518 (0x206), region = 40  ;;  %s1491_s8 = sand.u32 (!%p1476_p5), 1, %s1321_s19  }
  0x37   : > { %s1051_s9 = sshll.u32 (!%p1476_p5), %s1491_s8, 6  ;;  %s277_s17 = scalar_lea.sflag (!%p1476_p5), [#allocation3], %s1491_s8 }
  0x38   : > { %s280_s12 = scalar_lea.vmem (!%p1476_p5), [#allocation2], %s1051_s9 }
  0x3b   : > { %1304 = dma.done.wait (%p1424_p8), %s277_s17, 1024  }
  0x3c   : > { %1306 = vsyncadd (%p1424_p8), %s277_s17, 4294966272  ;;  %s286_s0 = scalar_lea.sflag [#allocation6], %s1491_s8  ;;  %s1500_s25 = scalar_lea.vmem [#allocation5], %s1051_s9 }
  0x3d   : > { %1308 = dma.done.wait (%p1424_p8), %s286_s0, 1024  }
  0x3e   : > { %1310 = vsyncadd (%p1424_p8), %s286_s0, 4294966272  ;;  %v1343_v0 = vmov 0.0   ;;  %vm1344_vm0 = vmmov 0   ;;  %v341_v1 = vld [vmem:[%s280_s12 + $0x8] sm:$0xff]  ;;  %v343_v2 = vld [vmem:[%s280_s12 + $0x18] sm:$0xff]  ;;  %vm375_vm1 = vcmask 130048  }
  0x3f   : > { %1079 = vmatprep.subr.mxu0 %v1343_v0  ;;  %1083 = vmatprep.mubr.msk.f32.mxu0 %vm1344_vm0, %v1343_v0  ;;  %v345_v3 = vld [vmem:[%s280_s12 + $0x28] sm:$0xff]  ;;  %v347_v4 = vld [vmem:[%s280_s12 + $0x38] sm:$0xff]  ;;  %v340_v11 = vld [vmem:[%s280_s12] sm:$0xff]  ;;  %p332_p8 = scmp.lt.s32.totalorder %s1329_s21, 1  ;;  %vm871_vm2 = vcmask 123904   ;;  %s1053_s26 = sshll.u32 %s1491_s8, 3 }
  0x40   : > { %1086 = vmatprep.subr.mxu1 %v1343_v0  ;;  %1090 = vmatprep.mubr.msk.f32.mxu1 %vm1344_vm0, %v1343_v0  ;;  %v349_v5 = vld [vmem:[%s1500_s25 + $0x8] sm:$0xff]  ;;  %v351_v6 = vld [vmem:[%s1500_s25 + $0x18] sm:$0xff]  ;;  %v342_v14 = vld [vmem:[%s280_s12 + $0x10] sm:$0xff]  ;;  %s1056_s15 = sshll.u32 %s1329_s21, 7  ;;  %s328_s9 = scalar_lea.vmem [#allocation7], %s1053_s26 }
  0x41   : > { %v353_v7 = vld [vmem:[%s1500_s25 + $0x28] sm:$0xff]  ;;  %v355_v8 = vld [vmem:[%s1500_s25 + $0x38] sm:$0xff]  ;;  %v358_v9 = vsub.f32 %v341_v1, %v349_v5  ;;  %v360_v10 = vsub.f32 %v343_v2, %v351_v6  ;;  %v344_v15 = vld [vmem:[%s280_s12 + $0x20] sm:$0xff]  ;;  %s333_s28 = scalar_select %p332_p8, %s1329_s21, 1  ;;  %v1345_v1 = vmov 1966171168  }
  0x42   : > { %v362_v12 = vsub.f32 %v345_v3, %v353_v7  ;;  %v364_v13 = vsub.f32 %v347_v4, %v355_v8  ;;  %v346_v16 = vld [vmem:[%s280_s12 + $0x30] sm:$0xff]  ;;  %v348_v19 = vld [vmem:[%s1500_s25] sm:$0xff]  ;;  %v856_v2 = vunpack.c.l.s4 %v1345_v1  ;;  %v858_v3 = vlaneseq  ;;  %s917_s17 = sshll.u32 %s328_s9, 4  ;;  %s903_s29 = scalar_lea.sflag [#allocation4], %s1491_s8  ;;  %s918_s17 = int_to_ptr.vmem [resolvable:$true] %s917_s17 }
  0x43   : > { %v366_v17 = vmul.f32 %v358_v9, %v358_v9  ;;  %v368_v18 = vmul.f32 %v360_v10, %v360_v10  ;;  %v350_v20 = vld [vmem:[%s1500_s25 + $0x10] sm:$0xff]  ;;  %v352_v21 = vld [vmem:[%s1500_s25 + $0x20] sm:$0xff]  ;;  %v357_v25 = vsub.f32 %v340_v11, %v348_v19  ;;  %s1054_s11 = sshll.u32 %s333_s28, 1  ;;  %s1253_s16 = scalar_lea.vmem %s918_s17, 128 }
  0x44   : > { %v370_v22 = vmul.f32 %v362_v12, %v362_v12  ;;  %v372_v23 = vmul.f32 %v364_v13, %v364_v13  ;;  %v354_v24 = vld [vmem:[%s1500_s25 + $0x30] sm:$0xff]  ;;  %v359_v26 = vsub.f32 %v342_v14, %v350_v20  ;;  %v356_v27 = vld [vmem:[%s1606_s4] sm:$0x3]  ;;  %v361_v30 = vsub.f32 %v344_v15, %v352_v21  ;;  %s338_s24 = scalar_lea.vmem %s1604_s2, %s1054_s11  ;;  %s1560_s25 = scalar_lea.hbm %s1607_s5, %s1056_s15 }
  0x45   : > { %v383_v28 = vsel %vm375_vm1, %v366_v17, 0.0  ;;  %v384_v29 = vsel %vm375_vm1, %v368_v18, 0.0  ;;  %v363_v31 = vsub.f32 %v346_v16, %v354_v24  ;;  %v365_v35 = vmul.f32 %v357_v25, %v357_v25  ;;  %v373_v9 = vld [vmem:[%s338_s24] sm:$0x1]  ;;  %v374_v10 = vld [vmem:[%s338_s24 + $0x1] sm:$0x1]  ;;  %p1254_p0 = scmp.ne.s32.totalorder %s918_s17, %s1253_s16 }
  0x46   : > { %v385_v32 = vadd.f32 %v384_v29, %v383_v28  ;;  %v386_v33 = vsel %vm375_vm1, %v370_v22, 0.0  ;;  %v388_v34 = vsel %vm375_vm1, %v372_v23, 0.0  ;;  %v367_v36 = vmul.f32 %v359_v26, %v359_v26  ;;  %s1346_s21 = smov [#allocation7]  }
  0x47   : > { %v369_v37 = vmul.f32 %v361_v30, %v361_v30  ;;  %v371_v38 = vmul.f32 %v363_v31, %v363_v31  ;;  %v391_v39 = vsel %vm375_vm1, %v356_v27, 0  ;;  %v376_v41 = vsel %vm375_vm1, %v365_v35, 0.0  ;;  %p1255_p2 = pnand %p1254_p0, %p1428_p9  ;;  %s1257_s28 = sshll.u32 %s1346_s21, 4  ;;  %s1258_s28 = int_to_ptr.vmem [resolvable:$false] %s1257_s28 }
  0x48   : > { %v387_v40 = vadd.f32 %v386_v33, %v385_v32  ;;  %v460_v42 = vand.u32 4294901760, %v391_v39  ;;  %v377_v43 = vsel %vm375_vm1, %v367_v36, 0.0  ;;  %v857_v6 = vunpack.c.0.s8 %v856_v2  ;;  %s1259_s11 = scalar_lea.vmem %s1258_s28, 256  ;;  %p1260_p6 = scmp.lt.s32.totalorder %s918_s17, %s1258_s28 }
  0x49   : > { %v379_v44 = vsel %vm375_vm1, %v369_v37, 0.0  ;;  %v378_v46 = vadd.f32 %v377_v43, %v376_v41  ;;  %v381_v48 = vsel %vm375_vm1, %v371_v38, 0.0  ;;  %v859_v7 = vshrl.u32 %v858_v3, 7  ;;  %p1256_p5 = pneg %p1255_p2  ;;  %p1261_p4 = scmp.lt.s32.totalorder %s1259_s11, %s1253_s16 }
  0x4a   : > { %v389_v45 = vadd.f32 %v388_v34, %v387_v40  ;;  %v461_v47 = vsub.f32 %v391_v39, %v460_v42  ;;  %v854_v11 = vcombine.low %v373_v9, %v374_v10 }
  0x4b   : > { %v380_v50 = vadd.f32 %v379_v44, %v378_v46  ;;  %v860_v12 = vsub.s32 %v857_v6, %v859_v7  ;;  %p1262_p7 = por %p1261_p4, %p1260_p6 }
  0x4c   : > { %v422_v49 = vand.u32 4294901760, %v389_v45  ;;  %v462_v51 = vand.u32 4294901760, %v461_v47 }
  0x4d   : > { %v382_v52 = vadd.f32 %v381_v48, %v380_v50  ;;  %v861_v18 = vrot.slane %v854_v11, %v860_v12  ;;  %p1263_p10 = pnand %p1262_p7, %p1256_p5 }
  0x4e   : > { %1080 = vmatpush3.msra.mxu0 %v422_v49  ;;  %v463_v53 = vsub.f32 %v461_v47, %v462_v51  ;;  %v500_v54 = vsub.f32 %v389_v45, %v422_v49  ;;  %v894_v45 = vand.u32 127, %v858_v3 }
  0x4f   : > { %1081 = vmatprep.subr.mxu0 %v1343_v0  ;;  %v425_v55 = vand.u32 4294901760, %v382_v52  ;;  %v868_v24 = vrot.slane %v861_v18, %v860_v12 }
  0x50   : > { %v464_v56 = vand.u32 4294901760, %v463_v53  ;;  %v501_v57 = vand.u32 4294901760, %v500_v54  ;;  %vm896_vm3 = vcmp.eq.s32.totalorder %v894_v45, 1  ;;  %vm895_vm4 = vcmp.eq.s32.totalorder %v894_v45, 0 }
  0x51   : > { %1082 = vmatpush3.msra.mxu0 %v425_v55  ;;  %v507_v59 = vsub.f32 %v382_v52, %v425_v55  ;;  %v882_v30 = vsel %vm871_vm2, %v868_v24, 0.0 }
  0x52   : > { %v502_v58 = vsub.f32 %v500_v54, %v501_v57  ;;  %1084 = vmatmul.mubr.f32.vlgmr.msra.gmra.mxu0 %v464_v56  ;;  %1093 = vmatprep.subr.mxu0 %v1343_v0 }
  0x53   : > { %1094 = vmatpush3.msra.mxu0 %v500_v54  ;;  %v508_v61 = vand.u32 4294901760, %v507_v59  ;;  %1097 = vmatprep.mubr.msk.f32.mxu0 %vm1344_vm0, %v1343_v0 }
  0x54   : > { %v503_v60 = vand.u32 4294901760, %v502_v58  ;;  %1095 = vmatprep.subr.mxu0 %v1343_v0 }
  0x55   : > { %v509_v62 = vsub.f32 %v507_v59, %v508_v61  ;;  %1096 = vmatpush3.msra.mxu0 %v507_v59 }
  0x56   : > { %1087 = vmatpush3.msra.mxu1 %v503_v60  ;;  %1098 = vmatmul.mubr.f32.vlgmr.msra.gmra.mxu0 %v461_v47 }
  0x57   : > { %1088 = vmatprep.subr.mxu1 %v1343_v0  ;;  %v510_v63 = vand.u32 4294901760, %v509_v62  ;;  %1107 = vmatprep.subr.mxu0 %v1343_v0 }
  0x58   : > { %1111 = vmatprep.mubr.msk.f32.mxu0 %vm1344_vm0, %v1343_v0  ;;  %1108 = vmatpush3.msra.mxu0 %v501_v57 }
  0x59   : > { %1089 = vmatpush3.msra.mxu1 %v510_v63  ;;  %1109 = vmatprep.subr.mxu0 %v1343_v0 }
  0x5a   : > { %1091 = vmatmul.mubr.f32.vlgmr.msra.gmra.mxu1 %v460_v42  ;;  %1100 = vmatprep.subr.mxu1 %v1343_v0 }
  0x5b   : > { %1101 = vmatpush3.msra.mxu1 %v422_v49  ;;  %1104 = vmatprep.mubr.msk.f32.mxu1 %vm1344_vm0, %v1343_v0 }
  0x5c   : > { %1102 = vmatprep.subr.mxu1 %v1343_v0  ;;  %1110 = vmatpush3.msra.mxu0 %v508_v61 }
  0x5d   : > { %1103 = vmatpush3.msra.mxu1 %v425_v55  ;;  %1112 = vmatmul.mubr.f32.vlgmr.msra.gmra.mxu0 %v460_v42 }
  0x5e   : > { %1105 = vmatmul.mubr.f32.vlgmr.msra.gmra.mxu1 %v462_v51  ;;  %1114 = vmatprep.subr.mxu1 %v1343_v0 }
  0x5f   : > { %1115 = vmatpush3.msra.mxu1 %v422_v49  ;;  %1118 = vmatprep.mubr.msk.f32.mxu1 %vm1344_vm0, %v1343_v0 }
  0x60   : > { %1116 = vmatprep.subr.mxu1 %v1343_v0 }
  0x61   : > { %1117 = vmatpush3.msra.mxu1 %v425_v55 }
  0x62   : > { %1119 = vmatmul.mubr.f32.vlgmr.msra.gmra.mxu1 %v460_v42 }
 0x112   : > { %v466_v4 = vpop.f32.mrf.mxu0 }
 0x114   : > { %v1085_v5 = vpop.f32.mrf.mxu0 }
 0x116   : > { %v623_v8 = vpop.f32.mrf.mxu0 }
 0x118   : > { %v1099_v0 = vpop.f32.mrf.mxu0 }
 0x11a   : > { %v547_v13 = vpop.f32.mrf.mxu1 }
 0x11b   : > { %v548_v14 = vadd.f32 %v547_v13, %v466_v4 }
 0x11c   : > { %v1092_v15 = vpop.f32.mrf.mxu1 }
 0x11d   : > { %v624_v16 = vadd.f32 %v623_v8, %v548_v14  ;;  %v775_v17 = vpop.f32.mrf.mxu0 }
 0x11e   : > { %v698_v19 = vpop.f32.mrf.mxu1 }
 0x11f   : > { %v699_v20 = vadd.f32 %v698_v19, %v624_v16  ;;  %v1113_v21 = vpop.f32.mrf.mxu0 }
 0x120   : > { %v1106_v22 = vpop.f32.mrf.mxu1 }
 0x121   : > { %v776_v23 = vadd.f32 %v775_v17, %v699_v20 }
 0x122   : > { %v848_v25 = vpop.f32.mrf.mxu1 }
 0x123   : > { %v849_v26 = vadd.f32 %v848_v25, %v776_v23 }
 0x124   : > { %v1120_v27 = vpop.f32.mrf.mxu1 }
 0x125   : > { %v870_v28 = vmul.f32 %v868_v24, %v849_v26 }
 0x127   : > { %v872_v29 = vsel %vm871_vm2, %v870_v28, 0.0 }
 0x128   : > { %873 = vadd.xlane.f32.xlu0 %v872_v29 }
 0x12c   : > { %883 = vadd.xlane.f32.xlu0 %v882_v30 }
 0x1b1   : > { %v874_v31 = vpop.xlane.xlu0 %873 }
 0x1b2   : > { %v875_v32 = vrot.slane %v874_v31, 4 }
 0x1b4   : > { %v876_v33 = vadd.f32 %v875_v32, %v874_v31 }
 0x1b5   : > { %v884_v34 = vpop.xlane.xlu0 %883 }
 0x1b6   : > { %v877_v35 = vrot.slane %v876_v33, 2  ;;  %v885_v36 = vrot.slane %v884_v34, 4 }
 0x1b8   : > { %v886_v37 = vadd.f32 %v885_v36, %v884_v34  ;;  %v878_v38 = vadd.f32 %v877_v35, %v876_v33 }
 0x1ba   : > { %v887_v39 = vrot.slane %v886_v37, 2  ;;  %v879_v40 = vrot.slane %v878_v38, 1 }
 0x1bc   : > { %v888_v41 = vadd.f32 %v887_v39, %v886_v37  ;;  %v880_v42 = vadd.f32 %v879_v40, %v878_v38 }
 0x1be   : > { %1121 = vpush %v880_v42  ;;  %v889_v43 = vrot.slane %v888_v41, 1 }
 0x1c0   : > { %v890_v44 = vadd.f32 %v889_v43, %v888_v41 }
 0x1c2   : > { %1123 = vpush %v890_v44 }
 0x1ef   : > { %s1122_s27 = spop %1121 }
 0x1f0   : > { %v899_v47 = vstv %s1122_s27 }
 0x1f3   : > { %s1124_s13 = spop %1123 }
 0x1f4   : > { %s892_s10 = smul.f32 8.0, %s1124_s13 }
 0x1f6   : > { %v897_v46 = vstv %s892_s10 }
 0x1f7   : > { %v898_v48 = vsel %vm896_vm3, %v897_v46, 0.0 }
 0x1f8   : > { %v900_v49 = vsel %vm895_vm4, %v899_v47, %v898_v48 }
 0x1f9   : > { %901 = vst [vmem:[%s328_s9] sm:$0xff] %v900_v49 }
 0x1fa   : > { %1266 = shalt.err (!%p1263_p10)
}
 0x1fb   : > { %s1267_s14 = scalar_lea.hbm %s1560_s25, 128  ;;  %s1271_s24 = scalar_lea.hbm %s1607_s5, 256 }
 0x1fc   : > { %p1268_p1 = scmp.ne.s32.totalorder %s1560_s25, %s1267_s14  ;;  %p1272_p8 = scmp.lt.s32.totalorder %s1560_s25, %s1607_s5 }
 0x1fd   : > { %p1273_p0 = scmp.lt.s32.totalorder %s1271_s24, %s1267_s14 }
 0x1fe   : > { %p1269_p13 = pnand %p1268_p1, %p1428_p9 }
 0x1ff   : > { %p1274_p2 = por %p1273_p0, %p1272_p8 }
 0x200   : > { %p1270_p3 = pneg %p1269_p13 }
 0x202   : > { %p1275_p5 = pnand %p1274_p2, %p1270_p3 }
 0x204   : > { %1278 = shalt.err (!%p1275_p5)
}
 0x205   : > { %1129 = dma.vmem_to_hbm [thread:$0]  (%p1428_p9), %s918_s17, 128, %s1560_s25, %s903_s29  }
 0x206 PF: > { %s929_s13 = sand.u32 1, %s1317_s18   ;;  %p1139_p6 = pnand %p1043_p12, %p1435_p11 }
 0x207   : > { %s930_s15 = scalar_lea.sflag [#allocation4], %s929_s13 }
 0x208   : > { %p1140_p4 = pneg %p1139_p6 }
 0x20a   : > { %1312 = dma.done.wait (%p1140_p4), %s930_s15, 128  }
 0x20b   : > { %1314 = vsyncadd (%p1140_p4), %s930_s15, 4294967168  ;;  %s24_s22 = sadd.s32 1, %s1337_s22   ;;  %s1618_s30 = sld [smem:[#allocation11_spill]] }
 0x20c   : > { %p21_p7 = scmp.ge.s32.totalorder %s24_s22, 4   ;;  %s1619_s18 = smov %s1321_s19 }
 0x20d   : > { %s1620_s19 = smov %s1325_s20  ;;  %s1621_s20 = smov %s1433_s6 }
 0x20e   : > { %s1622_s21 = smov %s1333_s3  ;;  %23 = sbr.rel (!%p21_p7) target bundleno = 10 (0xa), region = 101 }
 0x211   : > { %s1623_s3 = smov %s1618_s30 }
 0x213   :  { %935 = vsyncpa [#allocation3], 1 }
 0x214   :  { %937 = vsyncpa [#allocation3 + $0x1], 1 }
 0x215   :  { %938 = vsyncpa [#allocation6], 1 }
 0x216   :  { %940 = vsyncpa [#allocation6 + $0x1], 1 }
 0x217   :  { %941 = vsyncpa [#allocation4], 1 }
 0x218   :  { %943 = vsyncpa [#allocation4 + $0x1], 1 }

</bundles_post_ra>
